<compile_context>
chip_gen: v7x
topology: tpu7x:2x2x1
jax: 0.10.0
libtpu: 0.0.40
codegen_flags: <defaults>
</compile_context>

<pallas_src>
import jax
import jax.numpy as jnp
from jax.experimental import pallas as pl
from jax.experimental.pallas import tpu as pltpu


def _grouped_gemm_kernel(act_ref, lo_ref, hi_ref, mtile_ref, first_ref, expert_ref,
                         a_ref, b_ref, o_ref, acc_ref):
    w = pl.program_id(1)          # work-tile index (group, m-tile) pair
    k = pl.program_id(2)          # K reduction tile (innermost)
    nk = pl.num_programs(2)
    tm = a_ref.shape[0]

    @pl.when(act_ref[w] != 0)     # skip padding work items entirely
    def _active():
        # (tm, tk) x (tn, tk)^T on the MXU, f32 accumulation; weights stay in
        # their native column-major layout (no wrapper transpose).
        prod = jax.lax.dot_general(
            a_ref[...], b_ref[0],
            dimension_numbers=(((1,), (1,)), ((), ())),
            preferred_element_type=jnp.float32)

        @pl.when(k == 0)
        def _():                  # direct assign: saves a (tm,tn) f32 read + add
            acc_ref[...] = prod

        @pl.when(k != 0)
        def _():
            acc_ref[...] += prod

        @pl.when(k == nk - 1)
        def _store():
            lo = lo_ref[w]
            hi = hi_ref[w]
            row_start = mtile_ref[w] * tm
            acc = acc_ref[...]

            # Tile fully inside the group's row range -> plain store, no mask,
            # no read-back of the output block.
            interior = jnp.logical_and(lo <= row_start, hi >= row_start + tm)

            @pl.when(interior)
            def _():
                o_ref[...] = acc.astype(o_ref.dtype)

            @pl.when(jnp.logical_not(interior))
            def _():
                rows = row_start + jax.lax.broadcasted_iota(jnp.int32, (tm, 1), 0)
                mask = jnp.logical_and(rows >= lo, rows < hi)
                first = first_ref[w] != 0

                # First group touching this m-tile: define every row (zeros
                # outside the group) so the HBM writeback is fully initialized.
                @pl.when(first)
                def _():
                    o_ref[...] = jnp.where(mask, acc, 0.0).astype(o_ref.dtype)

                # Subsequent group sharing this m-tile: the output block is still
                # resident in VMEM (same block index on the previous work item),
                # so merge with what the previous group wrote.
                @pl.when(jnp.logical_not(first))
                def _():
                    prev = o_ref[...].astype(jnp.float32)
                    o_ref[...] = jnp.where(mask, acc, prev).astype(o_ref.dtype)


def _round_up(x, m):
    return ((x + m - 1) // m) * m


def _fit_tile(dim, pref, align):
    """Largest tile <= pref that is a multiple of `align` and divides `dim`."""
    if dim % align != 0:          # defensive; wrapper pads dims to `align` first
        return dim
    t = min(pref, dim)
    t = max(align, t - (t % align))
    while dim % t != 0:
        t -= align
    return t


def _tpu_vmem_capacity_bytes():
    try:
        info = pltpu.get_tpu_info()
        cap = getattr(info, "vmem_capacity_bytes", None)
        if cap:
            return int(cap)
    except Exception:
        pass
    return 64 * 1024 * 1024       # conservative fallback (v7x per-TC physical)


def grouped_gemm_pallas(a, b, batch_size, seg_indptr, weight_indices,
                        c_dtype=None, tm=None, tn=None, tk=None,
                        vmem_limit_bytes=None, b_buffering=None):
    """Segmented grouped GEMM.

    a: [M, K]
    b: [E, N, K]  column-major expert weights (native layout, NOT transposed).
    For each group g, rows seg_indptr[g]:seg_indptr[g+1] of `a` are multiplied by
    b[weight_indices[g]].T  ->  c[rows] = a[rows] @ b[e].T.
    """
    M, K = a.shape
    E, N, Kb = b.shape
    assert K == Kb
    assert batch_size >= 1
    out_dtype = c_dtype if c_dtype is not None else a.dtype

    # --- generation-aware defaults -------------------------------------------
    vmem_cap = _tpu_vmem_capacity_bytes()
    big_vmem = vmem_cap >= 96 * 1024 * 1024           # v5e / v6e (128 MiB physical)
    if vmem_limit_bytes is None:
        vmem_limit_bytes = int(0.75 * vmem_cap)        # headroom for Mosaic scratch
    if tm is None:
        tm = 512
    if tn is None:
        tn = 1024 if big_vmem else 512
    if tk is None:
        tk = 512

    # --- pad K / N up to lane multiples (no-op for production MoE shapes) ----
    K_pad = _round_up(K, 128)
    N_pad = _round_up(N, 128)
    if K_pad != K:
        a = jnp.pad(a, ((0, 0), (0, K_pad - K)))
        b = jnp.pad(b, ((0, 0), (0, 0), (0, K_pad - K)))
    if N_pad != N:
        b = jnp.pad(b, ((0, 0), (0, N_pad - N), (0, 0)))

    # --- tile sizes -----------------------------------------------------------
    out_itemsize = jnp.dtype(out_dtype).itemsize
    sub = 8 * max(1, 4 // out_itemsize)                # 8 f32, 16 bf16, 32 int8/fp8
    tm = int(min(tm, _round_up(M, sub)))
    tm = max(sub, (tm // sub) * sub)
    tk = int(_fit_tile(K_pad, min(tk, K_pad), 128))

    half_n = (N_pad // 2) // 128 * 128
    tn_pref = int(min(tn, N_pad))
    # Keep grid_n >= 2 when feasible so both v7x TensorCores get work (n is the
    # only "parallel" axis), without shrinking tn below 512 on large N.
    if half_n >= 512 or (half_n >= 128 and tn_pref >= N_pad):
        tn_pref = min(tn_pref, half_n)
    tn = int(_fit_tile(N_pad, tn_pref, 128))

    num_m_tiles = -(-M // tm)
    grid_k = K_pad // tk
    grid_n = N_pad // tn
    # Each group adds at most one extra (boundary-straddling) tile beyond M/tm.
    max_work = num_m_tiles + batch_size - 1

    seg_indptr = seg_indptr.astype(jnp.int32)
    weight_indices = weight_indices.astype(jnp.int32)

    # --- work-tile tables (plain XLA ops; shapes are static) ------------------
    lo_g = seg_indptr[:-1]                     # [G]
    hi_g = seg_indptr[1:]                      # [G]
    tiles_per_g = jnp.where(hi_g > lo_g,
                            (hi_g - 1) // tm - lo_g // tm + 1,
                            0).astype(jnp.int32)
    work_start = jnp.concatenate(
        [jnp.zeros((1,), jnp.int32), jnp.cumsum(tiles_per_g)]).astype(jnp.int32)
    num_real = work_start[batch_size]          # traced scalar

    w_ids = jnp.arange(max_work, dtype=jnp.int32)
    act_w = (w_ids < num_real).astype(jnp.int32)
    # Padding slots alias the last real work item (their blocks are already
    # resident; the kernel skips both compute and store for them).
    w_eff = jnp.minimum(w_ids, jnp.maximum(num_real - 1, 0))
    g_w = jnp.clip(
        jnp.searchsorted(work_start, w_eff, side='right').astype(jnp.int32) - 1,
        0, batch_size - 1)
    lo_w = lo_g[g_w]
    hi_w = hi_g[g_w]
    m_tile_w = (lo_w // tm + (w_eff - work_start[g_w])).astype(jnp.int32)
    expert_w = weight_indices[g_w]
    first_w = jnp.concatenate(
        [jnp.ones((1,), jnp.int32),
         (m_tile_w[1:] != m_tile_w[:-1]).astype(jnp.int32)])

    last_k = grid_k - 1

    def a_index(n, w, k, act, lo, hi, mt, fv, ex):
        # Padding work items pin k to the last real item's last k-block so the
        # already-resident block is reused and no DMA is issued for them.
        kk = k * act[w] + last_k * (1 - act[w])
        return (mt[w], kk)

    def b_index(n, w, k, act, lo, hi, mt, fv, ex):
        kk = k * act[w] + last_k * (1 - act[w])
        return (ex[w], n, kk)

    def o_index(n, w, k, act, lo, hi, mt, fv, ex):
        return (mt[w], n)

    b_spec_kwargs = {}
    if b_buffering is not None:
        b_spec_kwargs["pipeline_mode"] = pl.Buffered(int(b_buffering))

    # --- grid spec: n outermost (parallel), work tiles, k innermost -----------
    grid_spec = pltpu.PrefetchScalarGridSpec(
        num_scalar_prefetch=6,
        grid=(grid_n, max_work, grid_k),
        in_specs=[
            pl.BlockSpec((tm, tk), a_index),
            pl.BlockSpec((1, tn, tk), b_index, **b_spec_kwargs),
        ],
        out_specs=pl.BlockSpec((tm, tn), o_index),
        scratch_shapes=[pltpu.VMEM((tm, tn), jnp.float32)],
    )

    cost = pl.CostEstimate(
        flops=2 * M * K * N,
        transcendentals=0,
        bytes_accessed=(M * K * a.dtype.itemsize
                        + E * K * N * b.dtype.itemsize
                        + M * N * out_itemsize))

    out = pl.pallas_call(
        _grouped_gemm_kernel,
        out_shape=jax.ShapeDtypeStruct((M, N_pad), out_dtype),
        grid_spec=grid_spec,
        compiler_params=pltpu.CompilerParams(
            dimension_semantics=("parallel", "arbitrary", "arbitrary"),
            vmem_limit_bytes=int(vmem_limit_bytes)),
        cost_estimate=cost,
    )(act_w, lo_w, hi_w, m_tile_w, first_w, expert_w, a, b)

    if N_pad != N:
        out = out[:, :N]
    return out


class GroupedGemmRunner:
    """JAX/Pallas port of sglang's GroupedGemmRunner (non-flashinfer path)."""

    def __init__(self, device=None, use_flashinfer: bool = False,
                 use_per_token_if_dynamic: bool = True):
        assert not use_flashinfer, "flashinfer path not supported in Pallas port"
        self.use_flashinfer = use_flashinfer
        self.use_per_token_if_dynamic = use_per_token_if_dynamic

    def forward(self, a, b, c, batch_size, weight_column_major,
                seg_indptr=None, weight_indices=None,
                use_fp8_w8a8: bool = False, scale_a=None, scale_b=None,
                block_shape=None, c_dtype=None,
                tm=None, tn=None, tk=None, b_buffering=None):
        assert weight_column_major is True
        # TODO(synk): fp8 w8a8 / block-quant path (highest value on v7x, whose MXU
        # natively consumes fp8 and whose weight stream is the binding HBM cost).
        assert not use_fp8_w8a8, "fp8 path not implemented"
        if weight_indices is None:
            weight_indices = jnp.arange(batch_size, dtype=jnp.int32)
        if c_dtype is None:
            c_dtype = c.dtype if c is not None else a.dtype
        # Weights are consumed in their native column-major [E, N, K] layout:
        # no per-call transpose / weight copy.
        return grouped_gemm_pallas(a, b, batch_size, seg_indptr,
                                   weight_indices, c_dtype=c_dtype,
                                   tm=tm, tn=tn, tk=tk, b_buffering=b_buffering)

    __call__ = forward


def _reference(a, b, batch_size, seg_indptr, weight_indices):
    M, K = a.shape
    N = b.shape[1]
    c = jnp.zeros((M, N), dtype=jnp.float32)
    for g in range(batch_size):
        lo = int(seg_indptr[g])
        hi = int(seg_indptr[g + 1])
        if hi > lo:
            w = b[int(weight_indices[g])]                       # [N, K]
            c = c.at[lo:hi].set(
                jnp.dot(a[lo:hi].astype(jnp.float32), w.T.astype(jnp.float32),
                        precision=jax.lax.Precision.HIGHEST))
    return c


if __name__ == "__main__":
    key = jax.random.PRNGKey(0)
    k_a, k_b = jax.random.split(key)

    batch_size = 4      # number of expert groups
    K = 256             # hidden size
    N = 384             # expert output features
    # tokens per group: 40, 0, 90, 70  -> M = 200 total tokens (includes an empty group)
    seg_indptr = jnp.array([0, 40, 40, 130, 200], dtype=jnp.int32)
    M = 200
    weight_indices = jnp.array([2, 0, 3, 1], dtype=jnp.int32)   # exercise indirection

    a = jax.random.normal(k_a, (M, K), dtype=jnp.float32)
    b = jax.random.normal(k_b, (batch_size, N, K), dtype=jnp.float32)
    c = jnp.zeros((M, N), dtype=jnp.float32)

    runner = GroupedGemmRunner(device=None, use_flashinfer=False)

    # Small tiles: exercises multiple m-tiles, shared boundary tiles, n/k tiling,
    # the ragged last m-tile, the empty group and padding-slot skipping.
    out_small = runner(a, b, c, batch_size, weight_column_major=True,
                       seg_indptr=seg_indptr, weight_indices=weight_indices,
                       tm=64, tn=128, tk=128)
    out_small = jax.block_until_ready(out_small)

    # Default (generation-aware) tiles, clamped to the small problem.
    out_default = runner(a, b, c, batch_size, weight_column_major=True,
                         seg_indptr=seg_indptr, weight_indices=weight_indices)
    out_default = jax.block_until_ready(out_default)

    ref = _reference(a, b, batch_size, seg_indptr, weight_indices)
    for out in (out_small, out_default):
        assert out.shape == (M, N), out.shape
        assert jnp.allclose(out, ref, atol=5e-3, rtol=5e-3), \
            float(jnp.max(jnp.abs(out - ref)))

    print("KERNEL_OK")
</pallas_src>

<mosaic_0001>
module attributes {stable_mosaic.version = 11 : i64} {
  func.func @_grouped_gemm_kernel(%arg0: i32, %arg1: i32, %arg2: i32, %arg3: memref<7xi32, #tpu.memory_space<smem>>, %arg4: memref<7xi32, #tpu.memory_space<smem>>, %arg5: memref<7xi32, #tpu.memory_space<smem>>, %arg6: memref<7xi32, #tpu.memory_space<smem>>, %arg7: memref<7xi32, #tpu.memory_space<smem>>, %arg8: memref<7xi32, #tpu.memory_space<smem>>, %arg9: memref<64x128xf32, #tpu.memory_space<vmem>>, %arg10: memref<1x128x128xf32, #tpu.memory_space<vmem>>, %arg11: memref<64x128xf32, #tpu.memory_space<vmem>>, %arg12: memref<64x128xf32, #tpu.memory_space<vmem>>) attributes {dimension_semantics = [#tpu.dimension_semantics<parallel>, #tpu.dimension_semantics<arbitrary>, #tpu.dimension_semantics<arbitrary>], iteration_bounds = array<i64: 3, 7, 2>, scalar_prefetch = 6 : i64, scratch_operands = 1 : i64, tpu.core_type = #tpu.core_type<tc>, window_params = [{transform_indices = @transform_0, window_bounds = array<i64: 64, 128>}, {transform_indices = @transform_1, window_bounds = array<i64: 1, 128, 128>}, {transform_indices = @transform_2, window_bounds = array<i64: 64, 128>}]} {
    %0 = arith.index_cast %arg1 : i32 to index
    %1 = memref.load %arg3[%0] : memref<7xi32, #tpu.memory_space<smem>>
    %c0_i32 = arith.constant 0 : i32
    %2 = arith.cmpi ne, %1, %c0_i32 : i32
    %3 = arith.extui %2 : i1 to i32
    %c0_i32_0 = arith.constant 0 : i32
    %4 = arith.cmpi ne, %3, %c0_i32_0 : i32
    scf.if %4 {
      %c0 = arith.constant 0 : index
      %c0_1 = arith.constant 0 : index
      %5 = vector.load %arg9[%c0, %c0_1] : memref<64x128xf32, #tpu.memory_space<vmem>>, vector<64x128xf32>
      %c0_2 = arith.constant 0 : index
      %c0_3 = arith.constant 0 : index
      %c0_4 = arith.constant 0 : index
      %6 = vector.load %arg10[%c0_2, %c0_3, %c0_4] : memref<1x128x128xf32, #tpu.memory_space<vmem>>, vector<1x128x128xf32>
      %7 = vector.shape_cast %6 : vector<1x128x128xf32> to vector<128x128xf32>
      %cst = arith.constant dense<0.000000e+00> : vector<64x128xf32>
      %8 = tpu.matmul %5, %7, %cst {dimension_numbers = #tpu.dot_dimension_numbers<[1], [1], [0], [0], [0, 0, 1, 0], [], []>} : vector<64x128xf32>, vector<128x128xf32>, vector<64x128xf32> -> vector<64x128xf32>
      %c0_i32_5 = arith.constant 0 : i32
      %9 = arith.cmpi eq, %arg2, %c0_i32_5 : i32
      %10 = arith.extui %9 : i1 to i32
      %c0_i32_6 = arith.constant 0 : i32
      %11 = arith.cmpi ne, %10, %c0_i32_6 : i32
      scf.if %11 {
        %c0_10 = arith.constant 0 : index
        %c0_11 = arith.constant 0 : index
        %18 = vector.load %arg12[%c0_10, %c0_11] : memref<64x128xf32, #tpu.memory_space<vmem>>, vector<64x128xf32>
        tpu.vector_store %arg12[%c0_10, %c0_11], %8 {strides = array<i32>} : memref<64x128xf32, #tpu.memory_space<vmem>>, vector<64x128xf32>,
      } else {
      }
      %c0_i32_7 = arith.constant 0 : i32
      %12 = arith.cmpi ne, %arg2, %c0_i32_7 : i32
      %13 = arith.extui %12 : i1 to i32
      %c0_i32_8 = arith.constant 0 : i32
      %14 = arith.cmpi ne, %13, %c0_i32_8 : i32
      scf.if %14 {
        %c0_10 = arith.constant 0 : index
        %c0_11 = arith.constant 0 : index
        %18 = vector.load %arg12[%c0_10, %c0_11] : memref<64x128xf32, #tpu.memory_space<vmem>>, vector<64x128xf32>
        %19 = arith.addf %18, %8 : vector<64x128xf32>
        %c0_12 = arith.constant 0 : index
        %c0_13 = arith.constant 0 : index
        %20 = vector.load %arg12[%c0_12, %c0_13] : memref<64x128xf32, #tpu.memory_space<vmem>>, vector<64x128xf32>
        tpu.vector_store %arg12[%c0_12, %c0_13], %19 {strides = array<i32>} : memref<64x128xf32, #tpu.memory_space<vmem>>, vector<64x128xf32>,
      } else {
      }
      %c1_i32 = arith.constant 1 : i32
      %15 = arith.cmpi eq, %arg2, %c1_i32 : i32
      %16 = arith.extui %15 : i1 to i32
      %c0_i32_9 = arith.constant 0 : i32
      %17 = arith.cmpi ne, %16, %c0_i32_9 : i32
      scf.if %17 {
        %18 = arith.index_cast %arg1 : i32 to index
        %19 = memref.load %arg4[%18] : memref<7xi32, #tpu.memory_space<smem>>
        %20 = arith.index_cast %arg1 : i32 to index
        %21 = memref.load %arg5[%20] : memref<7xi32, #tpu.memory_space<smem>>
        %22 = arith.index_cast %arg1 : i32 to index
        %23 = memref.load %arg6[%22] : memref<7xi32, #tpu.memory_space<smem>>
        %c64_i32 = arith.constant 64 : i32
        %24 = arith.muli %23, %c64_i32 : i32
        %c0_10 = arith.constant 0 : index
        %c0_11 = arith.constant 0 : index
        %25 = vector.load %arg12[%c0_10, %c0_11] : memref<64x128xf32, #tpu.memory_space<vmem>>, vector<64x128xf32>
        %26 = arith.cmpi sle, %19, %24 : i32
        %c64_i32_12 = arith.constant 64 : i32
        %27 = arith.addi %24, %c64_i32_12 : i32
        %28 = arith.cmpi sge, %21, %27 : i32
        %29 = arith.andi %26, %28 : i1
        %30 = arith.extui %29 : i1 to i32
        %c0_i32_13 = arith.constant 0 : i32
        %31 = arith.cmpi ne, %30, %c0_i32_13 : i32
        scf.if %31 {
          %c0_15 = arith.constant 0 : index
          %c0_16 = arith.constant 0 : index
          %35 = vector.load %arg11[%c0_15, %c0_16] : memref<64x128xf32, #tpu.memory_space<vmem>>, vector<64x128xf32>
          tpu.vector_store %arg11[%c0_15, %c0_16], %25 {strides = array<i32>} : memref<64x128xf32, #tpu.memory_space<vmem>>, vector<64x128xf32>,
        } else {
        }
        %true = arith.constant true
        %32 = arith.xori %29, %true : i1
        %33 = arith.extui %32 : i1 to i32
        %c0_i32_14 = arith.constant 0 : i32
        %34 = arith.cmpi ne, %33, %c0_i32_14 : i32
        scf.if %34 {
          %35 = tpu.iota {dimensions = array<i32: 0>} : vector<64x1xi32>
          %36 = vector.broadcast %24 : i32 to vector<64x1xi32>
          %37 = arith.addi %36, %35 : vector<64x1xi32>
          %38 = vector.broadcast %19 : i32 to vector<64x1xi32>
          %39 = arith.cmpi sge, %37, %38 : vector<64x1xi32>
          %40 = vector.broadcast %21 : i32 to vector<64x1xi32>
          %41 = arith.cmpi slt, %37, %40 : vector<64x1xi32>
          %42 = arith.andi %39, %41 : vector<64x1xi1>
          %43 = arith.index_cast %arg1 : i32 to index
          %44 = memref.load %arg7[%43] : memref<7xi32, #tpu.memory_space<smem>>
          %c0_i32_15 = arith.constant 0 : i32
          %45 = arith.cmpi ne, %44, %c0_i32_15 : i32
          %46 = arith.extui %45 : i1 to i32
          %c0_i32_16 = arith.constant 0 : i32
          %47 = arith.cmpi ne, %46, %c0_i32_16 : i32
          scf.if %47 {
            %cst_19 = arith.constant 0.000000e+00 : f32
            %51 = vector.shape_cast %42 : vector<64x1xi1> to vector<64x1xi1>
            %52 = vector.broadcast %51 : vector<64x1xi1> to vector<64x128xi1>
            %53 = vector.broadcast %cst_19 : f32 to vector<64x128xf32>
            %54 = arith.select %52, %25, %53 : vector<64x128xi1>, vector<64x128xf32>
            %c0_20 = arith.constant 0 : index
            %c0_21 = arith.constant 0 : index
            %55 = vector.load %arg11[%c0_20, %c0_21] : memref<64x128xf32, #tpu.memory_space<vmem>>, vector<64x128xf32>
            tpu.vector_store %arg11[%c0_20, %c0_21], %54 {strides = array<i32>} : memref<64x128xf32, #tpu.memory_space<vmem>>, vector<64x128xf32>,
          } else {
          }
          %true_17 = arith.constant true
          %48 = arith.xori %45, %true_17 : i1
          %49 = arith.extui %48 : i1 to i32
          %c0_i32_18 = arith.constant 0 : i32
          %50 = arith.cmpi ne, %49, %c0_i32_18 : i32
          scf.if %50 {
            %c0_19 = arith.constant 0 : index
            %c0_20 = arith.constant 0 : index
            %51 = vector.load %arg11[%c0_19, %c0_20] : memref<64x128xf32, #tpu.memory_space<vmem>>, vector<64x128xf32>
            %52 = vector.shape_cast %42 : vector<64x1xi1> to vector<64x1xi1>
            %53 = vector.broadcast %52 : vector<64x1xi1> to vector<64x128xi1>
            %54 = arith.select %53, %25, %51 : vector<64x128xi1>, vector<64x128xf32>
            %c0_21 = arith.constant 0 : index
            %c0_22 = arith.constant 0 : index
            %55 = vector.load %arg11[%c0_21, %c0_22] : memref<64x128xf32, #tpu.memory_space<vmem>>, vector<64x128xf32>
            tpu.vector_store %arg11[%c0_21, %c0_22], %54 {strides = array<i32>} : memref<64x128xf32, #tpu.memory_space<vmem>>, vector<64x128xf32>,
          } else {
          }
        } else {
        }
      } else {
      }
    } else {
    }
    return
  }
  func.func @transform_0(%arg0: i32, %arg1: i32, %arg2: i32, %arg3: memref<7xi32, #tpu.memory_space<smem>>, %arg4: memref<7xi32, #tpu.memory_space<smem>>, %arg5: memref<7xi32, #tpu.memory_space<smem>>, %arg6: memref<7xi32, #tpu.memory_space<smem>>, %arg7: memref<7xi32, #tpu.memory_space<smem>>, %arg8: memref<7xi32, #tpu.memory_space<smem>>) -> (i32, i32) {
    %0 = arith.index_cast %arg1 : i32 to index
    %1 = memref.load %arg3[%0] : memref<7xi32, #tpu.memory_space<smem>>
    %2 = arith.muli %arg2, %1 : i32
    %3 = arith.index_cast %arg1 : i32 to index
    %4 = memref.load %arg3[%3] : memref<7xi32, #tpu.memory_space<smem>>
    %c1_i32 = arith.constant 1 : i32
    %5 = arith.subi %c1_i32, %4 : i32
    %c1_i32_0 = arith.constant 1 : i32
    %6 = arith.muli %c1_i32_0, %5 : i32
    %7 = arith.addi %2, %6 : i32
    %8 = arith.index_cast %arg1 : i32 to index
    %9 = memref.load %arg6[%8] : memref<7xi32, #tpu.memory_space<smem>>
    %c0_i32 = arith.constant 0 : i32
    return %9, %7 : i32, i32
  }
  func.func @transform_1(%arg0: i32, %arg1: i32, %arg2: i32, %arg3: memref<7xi32, #tpu.memory_space<smem>>, %arg4: memref<7xi32, #tpu.memory_space<smem>>, %arg5: memref<7xi32, #tpu.memory_space<smem>>, %arg6: memref<7xi32, #tpu.memory_space<smem>>, %arg7: memref<7xi32, #tpu.memory_space<smem>>, %arg8: memref<7xi32, #tpu.memory_space<smem>>) -> (i32, i32, i32) {
    %0 = arith.index_cast %arg1 : i32 to index
    %1 = memref.load %arg3[%0] : memref<7xi32, #tpu.memory_space<smem>>
    %2 = arith.muli %arg2, %1 : i32
    %3 = arith.index_cast %arg1 : i32 to index
    %4 = memref.load %arg3[%3] : memref<7xi32, #tpu.memory_space<smem>>
    %c1_i32 = arith.constant 1 : i32
    %5 = arith.subi %c1_i32, %4 : i32
    %c1_i32_0 = arith.constant 1 : i32
    %6 = arith.muli %c1_i32_0, %5 : i32
    %7 = arith.addi %2, %6 : i32
    %8 = arith.index_cast %arg1 : i32 to index
    %9 = memref.load %arg8[%8] : memref<7xi32, #tpu.memory_space<smem>>
    %c0_i32 = arith.constant 0 : i32
    return %9, %arg0, %7 : i32, i32, i32
  }
  func.func @transform_2(%arg0: i32, %arg1: i32, %arg2: i32, %arg3: memref<7xi32, #tpu.memory_space<smem>>, %arg4: memref<7xi32, #tpu.memory_space<smem>>, %arg5: memref<7xi32, #tpu.memory_space<smem>>, %arg6: memref<7xi32, #tpu.memory_space<smem>>, %arg7: memref<7xi32, #tpu.memory_space<smem>>, %arg8: memref<7xi32, #tpu.memory_space<smem>>) -> (i32, i32) {
    %0 = arith.index_cast %arg1 : i32 to index
    %1 = memref.load %arg6[%0] : memref<7xi32, #tpu.memory_space<smem>>
    %c0_i32 = arith.constant 0 : i32
    return %1, %arg0 : i32, i32
  }
}

</mosaic_0001>

<bundles_post_ra>
// kernel: tpu_custom_call.1
= control target key start
LH: loop header
LB: loop body
LE: loop exit
PB: predicated region body
PF: predicated region fallthrough
CT: control target
= control target key end

     0   :  { %s2111_s0 = inlined_call_operand.hbm [shape: s32[7], index: 0, kind: input, shape index: {}]   ;;  %s2112_s6 = inlined_call_operand.hbm [shape: f32[200,256], index: 6, kind: input, shape index: {}]   ;;  %s2113_s7 = inlined_call_operand.hbm [shape: f32[4,384,256], index: 7, kind: input, shape index: {}]   ;;  %s2114_s8 = inlined_call_operand.hbm [shape: f32[200,384], index: 8, kind: output, shape index: {}]   ;;  %s2115_s1 = inlined_call_operand.hbm [shape: s32[7], index: 1, kind: input, shape index: {}]   ;;  %s2116_s2 = inlined_call_operand.hbm [shape: s32[7], index: 2, kind: input, shape index: {}]   ;;  %s2117_s3 = inlined_call_operand.hbm [shape: s32[7], index: 3, kind: input, shape index: {}]   ;;  %s2118_s4 = inlined_call_operand.hbm [shape: s32[7], index: 4, kind: input, shape index: {}]   ;;  %s2119_s5 = inlined_call_operand.hbm [shape: s32[7], index: 5, kind: input, shape index: {}]  }
   0x1   :  { %2139 = sst [smem:[#allocation40_spill]] %s2112_s6  ;;  %s1107_s29 = scalar_lea.hbm %s2111_s0, 16 }
   0x2   :  { %2140 = sst [smem:[#allocation41_spill]] %s2113_s7  ;;  %p1108_p0 = scmp.ne.s32.totalorder %s2111_s0, %s1107_s29 }
   0x3   :  { %2141 = sst [smem:[#allocation42_spill]] %s2114_s8  ;;  %p1111_p1 = scmp.lt.u32.totalorder %s1107_s29, %s2111_s0 }
   0x5   :  { %p1113_p2 = pnand %p1111_p1, %p1108_p0 }
   0x7   :  { %1116 = shalt.err (!%p1113_p2)  }
   0x8   :  { %s1393_s12 = smov [#allocation4]   ;;  %s1117_s17 = scalar_lea.hbm %s2115_s1, 16 }
   0x9   :  { %14 = dma.hbm_to_smem %s2111_s0, 16, %s1393_s12, [#allocation3] }
   0xa   :  { %p1118_p3 = scmp.ne.s32.totalorder %s2115_s1, %s1117_s17  ;;  %p1121_p4 = scmp.lt.u32.totalorder %s1117_s17, %s2115_s1 }
   0xc   :  { %p1123_p5 = pnand %p1121_p4, %p1118_p3 }
   0xe   :  { %1126 = shalt.err (!%p1123_p5)  }
   0xf   :  { %s1394_s22 = smov [#allocation5]   ;;  %s1127_s26 = scalar_lea.hbm %s2116_s2, 16 }
  0x10   :  { %16 = dma.hbm_to_smem %s2115_s1, 16, %s1394_s22, [#allocation3] }
  0x11   :  { %p1128_p6 = scmp.ne.s32.totalorder %s2116_s2, %s1127_s26  ;;  %p1131_p7 = scmp.lt.u32.totalorder %s1127_s26, %s2116_s2 }
  0x13   :  { %p1133_p8 = pnand %p1131_p7, %p1128_p6 }
  0x15   :  { %1136 = shalt.err (!%p1133_p8)  }
  0x16   :  { %s1395_s9 = smov [#allocation6]   ;;  %s1137_s13 = scalar_lea.hbm %s2117_s3, 16 }
  0x17   :  { %18 = dma.hbm_to_smem %s2116_s2, 16, %s1395_s9, [#allocation3] }
  0x18   :  { %p1138_p9 = scmp.ne.s32.totalorder %s2117_s3, %s1137_s13  ;;  %p1141_p10 = scmp.lt.u32.totalorder %s1137_s13, %s2117_s3 }
  0x1a   :  { %p1143_p11 = pnand %p1141_p10, %p1138_p9 }
  0x1c   :  { %1146 = shalt.err (!%p1143_p11)  }
  0x1d   :  { %s1396_s18 = smov [#allocation7]   ;;  %s1147_s22 = scalar_lea.hbm %s2118_s4, 16 }
  0x1e   :  { %20 = dma.hbm_to_smem %s2117_s3, 16, %s1396_s18, [#allocation3] }
  0x1f   :  { %p1148_p12 = scmp.ne.s32.totalorder %s2118_s4, %s1147_s22  ;;  %p1151_p13 = scmp.lt.u32.totalorder %s1147_s22, %s2118_s4 }
  0x21   :  { %p1153_p0 = pnand %p1151_p13, %p1148_p12 }
  0x23   :  { %1156 = shalt.err (!%p1153_p0)  }
  0x24   :  { %s1397_s26 = smov [#allocation8]   ;;  %s1157_s30 = scalar_lea.hbm %s2119_s5, 16 }
  0x25   :  { %22 = dma.hbm_to_smem %s2118_s4, 16, %s1397_s26, [#allocation3] }
  0x26   :  { %p1158_p1 = scmp.ne.s32.totalorder %s2119_s5, %s1157_s30  ;;  %p1161_p2 = scmp.lt.u32.totalorder %s1157_s30, %s2119_s5 }
  0x28   :  { %p1163_p3 = pnand %p1161_p2, %p1158_p1 }
  0x2a   :  { %1166 = shalt.err (!%p1163_p3)  }
  0x2b   :  { %s1398_s12 = smov [#allocation9]  }
  0x2c   :  { %24 = dma.hbm_to_smem %s2119_s5, 16, %s1398_s12, [#allocation3] }
  0x2d   :  { %1315 = dma.done.wait [#allocation3], 96 }
  0x2e   :  { %1316 = vsyncadd [#allocation3], 4294967200 }
  0x2f   :  { %26 = sfence }
  0x30   :  { %27 = vsyncpa [#allocation11], 0 }
  0x31   :  { %29 = vsyncpa [#allocation11 + $0x1], 0 }
  0x32   :  { %30 = vsyncpa [#allocation14], 0 }
  0x33   :  { %32 = vsyncpa [#allocation14 + $0x1], 0 }
  0x34   :  { %33 = vsyncpa [#allocation12], 0 }
  0x35   :  { %35 = vsyncpa [#allocation12 + $0x1], 0  ;;  %s1528_s4 = smov 0   ;;  %s1530_s15 = smov 0  }
  0x36   :  { %s1532_s16 = smov 0   ;;  %s1534_s17 = smov 0  }
  0x37   :  { %s1536_s18 = smov 0   ;;  %s1538_s5 = smov 0  }
  0x38   :  { %s1540_s19 = smov 0   ;;  %s1542_s20 = smov 0  }
  0x39   :  { %s1544_s2 = smov 0   ;;  %s1546_s21 = smov 0  }
  0x3a   :  { %s1548_s22 = smov 0   ;;  %s1550_s23 = smov 0  }
  0x3b   :  { %s1552_s24 = smov 0   ;;  %s1554_s0 = smov 0  }
  0x3c   :  { %s1556_s25 = smov 0   ;;  %s1558_s26 = smov 0  }
  0x3d LB: > { %2142 = sst [smem:[#allocation22_spill]] %s1331_s4  ;;  %s2120_s27 = sadd.s32 4294967295, %s1391_s26   ;;  %s1391_s26 = sphi %s1558_s26, %s41_s26   ;;  %s1387_s25 = sphi %s1556_s25, %s2224_s25   ;;  %s1383_s0 = sphi %s1554_s0, %s2223_s0   ;;  %s1379_s24 = sphi %s1552_s24, %s2232_s24   ;;  %s1375_s23 = sphi %s1550_s23, %s2231_s23   ;;  %s1371_s22 = sphi %s1548_s22, %s2220_s22   ;;  %s1367_s21 = sphi %s1546_s21, %s2230_s21   ;;  %s1363_s2 = sphi %s1544_s2, %s2219_s2   ;;  %s1359_s20 = sphi %s1542_s20, %s2218_s20   ;;  %s1355_s19 = sphi %s1540_s19, %s2217_s19   ;;  %s1351_s5 = sphi %s1538_s5, %s2216_s5   ;;  %s1347_s18 = sphi %s1536_s18, %s2229_s18   ;;  %s1343_s17 = sphi %s1534_s17, %s2228_s17   ;;  %s1339_s16 = sphi %s1532_s16, %s2214_s16   ;;  %s1335_s15 = sphi %s1530_s15, %s2227_s15   ;;  %s1331_s4 = sphi %s1528_s4, %s2225_s4  }
  0x3e   : > { %2143 = sst [smem:[#allocation23_spill]] %s1339_s16  ;;  %s53_s3 = sadd.s32 1, %s1379_s24 }
  0x3f   : > { %2144 = sst [smem:[#allocation24_spill]] %s1351_s5  ;;  %s56_s29 = sadd.s32 1, %s1383_s0 }
  0x40   : > { %2145 = sst [smem:[#allocation25_spill]] %s1359_s20  ;;  %p54_p4 = scmp.ge.s32.totalorder %s53_s3, 2 }
  0x41   : > { %2146 = sst [smem:[#allocation26_spill]] %s1363_s2  ;;  %s60_s30 = sadd.s32 1, %s1387_s25 }
  0x42   : > { %2147 = sst [smem:[#allocation27_spill]] %s1367_s21  ;;  %s2234_s3 = smov (%p54_p4, %s53_s3), 0 }
  0x43   : > { %2148 = sst [smem:[#allocation28_spill]] %s1371_s22  ;;  %s2236_s29 = smov (!%p54_p4, %s56_s29), %s1383_s0 }
  0x44   : > { %2149 = sst [smem:[#allocation29_spill]] %s1375_s23  ;;  %p86_p5 = scmp.ne.s32.totalorder %s1363_s2, %s1359_s20 }
  0x45   : > { %2150 = sst [smem:[#allocation30_spill]] %s1383_s0  ;;  %p58_p6 = scmp.ge.s32.totalorder %s2236_s29, 7 }
  0x46   : > { %2151 = sst [smem:[#allocation31_spill]] %s1387_s25  ;;  %p87_p7 = scmp.eq.s32.totalorder %s1391_s26, 0 }
  0x47   : > { %s64_s9 = sld [smem:[#allocation4 + %s1383_s0]]  ;;  %p92_p8 = scmp.ne.s32.totalorder %s1359_s20, %s1355_s19 }
  0x48   : > { %s1615_s10 = sld [smem:[#allocation7 + %s1383_s0]]  ;;  %p1628_p9 = scmp.eq.s32.totalorder %s2120_s27, 0 }
  0x49   : > { %2152 = sst [smem:[#allocation32_spill]] %s2234_s3  ;;  %s2238_s29 = smov (%p58_p6, %s2236_s29), 0 }
  0x4a   : > { %2154 = sst [smem:[#allocation33_spill]] %s2238_s29  ;;  %s2240_s30 = smov (!%p58_p6, %s60_s30), %s1387_s25 }
  0x4b   : > { %p62_p10 = scmp.ge.s32.totalorder %s2240_s30, 3  ;;  %s69_s14 = sld [smem:[#allocation4 + %s2238_s29]] }
  0x4c   : > { %s73_s28 = sld [smem:[#allocation7 + %s2238_s29]]  ;;  %p1645_p11 = por %p87_p7, %p86_p5 }
  0x4d   : > { %s65_s12 = smul.u32 %s1379_s24, %s64_s9  ;;  %s66_s13 = ssub.s32 1, %s64_s9 }
  0x4e   : > { %s2242_s30 = smov (%p62_p10, %s2240_s30), 0  ;;  %p1651_p12 = por %p1628_p9, %p92_p8 }
  0x4f   : > { %s67_s19 = sadd.s32 %s66_s13, %s65_s12  ;;  %2155 = sst [smem:[#allocation34_spill]] %s2242_s30 }
  0x50   : > { %s2156_s27 = scalar_select %p1645_p11, 1, 0 }
  0x51   : > { %s2158_s9 = scalar_select %p1651_p12, 1, 0 }
  0x52   : > { %2157 = sst [smem:[#allocation35_spill]] %s2156_s27  ;;  %s70_s23 = smul.u32 %s69_s14, %s2234_s3 }
  0x53   : > { %2159 = sst [smem:[#allocation36_spill]] %s2158_s9  ;;  %s71_s21 = ssub.s32 1, %s69_s14 }
  0x54   : > { %s102_s11 = sld [smem:[#allocation4 + %s1383_s0]]  ;;  %s74_s22 = ssub.s32 %s1615_s10, %s73_s28 }
  0x55   : > { %s106_s12 = sld [smem:[#allocation9 + %s1383_s0]]  ;;  %s1663_s20 = ssub.s32 %s1387_s25, %s2242_s30 }
  0x56   : > { %s107_s13 = sld [smem:[#allocation4 + %s2238_s29]]  ;;  %s72_s7 = sadd.s32 %s71_s21, %s70_s23 }
  0x57   : > { %s111_s8 = sld [smem:[#allocation9 + %s2238_s29]]  ;;  %s119_s6 = sadd.s32 1, %s1351_s5 }
  0x58   : > { %s75_s27 = ssub.s32 %s67_s19, %s72_s7  ;;  %p126_p13 = scmp.ne.s32.totalorder %s1351_s5, %s1347_s18 }
  0x59   : > { %s76_s9 = sor.u32 %s75_s27, %s74_s22  ;;  %s2160_s23 = sadd.s32 1, %s1363_s2 }
  0x5a   : > { %s103_s4 = smul.u32 %s1379_s24, %s102_s11  ;;  %p77_p0 = scmp.eq.s32.totalorder %s76_s9, 0 }
  0x5b   : > { %s104_s14 = ssub.s32 1, %s102_s11  ;;  %s2162_s7 = sld [smem:[#allocation22_spill]] }
  0x5c   : > { %s105_s28 = sadd.s32 %s104_s14, %s103_s4  ;;  %s108_s21 = smul.u32 %s107_s13, %s2234_s3 }
  0x5d   : > { %s1673_s10 = scalar_select %p77_p0, %s1363_s2, %s2160_s23  }
  0x5e   : > { %s109_s19 = ssub.s32 1, %s107_s13  ;;  %s112_s22 = ssub.s32 %s106_s12, %s111_s8 }
  0x5f   : > { %2161 = sst [smem:[#allocation37_spill]] %s1673_s10  ;;  %s110_s27 = sadd.s32 %s109_s19, %s108_s21 }
  0x60   : > { %s114_s30 = sor.u32 %s1663_s20, %s112_s22  ;;  %s115_s25 = ssub.s32 %s105_s28, %s110_s27 }
  0x61   : > { %p1681_p1 = por %p126_p13, %p87_p7  ;;  %s116_s11 = sor.u32 %s115_s25, %s114_s30 }
  0x62   : > { %p132_p2 = scmp.ne.s32.totalorder %s1347_s18, %s1343_s17  ;;  %p117_p3 = scmp.eq.s32.totalorder %s116_s11, 0 }
  0x63   : > { %s142_s9 = sld [smem:[#allocation7 + %s1383_s0]]  ;;  %p159_p5 = scmp.ne.s32.totalorder %s1339_s16, %s1335_s15 }
  0x64   : > { %p1690_p4 = por %p132_p2, %p1628_p9  ;;  %s143_s8 = sld [smem:[#allocation7 + %s2238_s29]] }
  0x65   : > { %s1696_s12 = scalar_select %p117_p3, %s1351_s5, %s119_s6  }
  0x66   : > { %s2164_s13 = scalar_select %p1690_p4, 1, 0 }
  0x67   : > { %2165 = sst [smem:[#allocation38_spill]] %s1696_s12  ;;  %s2166_s14 = sadd.s32 4294967295, %s1391_s26  }
  0x68   : > { %p160_p6 = scmp.eq.s32.totalorder %s2166_s14, 41  ;;  %p165_p7 = scmp.ne.s32.totalorder %s1335_s15, %s2162_s7 }
  0x69   : > { %s2167_s28 = sadd.s32 4294967294, %s1391_s26   ;;  %s149_s21 = sadd.s32 1, %s1339_s16 }
  0x6a   : > { %p166_p8 = scmp.eq.s32.totalorder %s2167_s28, 41  ;;  %p1706_p10 = por %p160_p6, %p159_p5 }
  0x6b   : > { %s144_s17 = ssub.s32 %s142_s9, %s143_s8  ;;  %p797_p0 = scmp.ge.s32.totalorder %s1391_s26, 42 }
  0x6c   : > { %s2168_s25 = scalar_select %p1706_p10, 1, 0 }
  0x6d   : > { %p1710_p13 = por %p166_p8, %p165_p7  ;;  %s146_s1 = sor.u32 %s144_s17, %s1663_s20 }
  0x6e   : > { %p147_p9 = scmp.eq.s32.totalorder %s146_s1, 0  ;;  %182 = sbr.rel (%p797_p0) target bundleno = 205 (0xcd), region = 16 }
  0x6f   : > { %s2169_s30 = scalar_select %p1710_p13, 1, 0 }
  0x70   : > { %s1717_s6 = scalar_select %p147_p9, %s1339_s16, %s149_s21  }
  0x72   : > { %2170 = sst [smem:[#allocation39_spill]] %s1717_s6 }
  0x75   : > { %185 = sbr.rel (!%p1645_p11) target bundleno = 164 (0xa4), region = 20  ;;  %s186_s7 = sand.u32 (%p1645_p11), 1, %s1363_s2  }
  0x76   : > { %s191_s19 = sld [smem:[#allocation4 + %s1383_s0]] (%p1645_p11)  ;;  %s798_s22 = sshll.u32 (%p1645_p11), %s186_s7, 6 }
  0x77   : > { %s195_s27 = sld [smem:[#allocation7 + %s1383_s0]] (%p1645_p11)  ;;  %s1729_s1 = scalar_lea.sflag (%p1645_p11), [#allocation11], %s186_s7 }
  0x78   : > { %s190_s21 = scalar_lea.vmem (%p1645_p11), [#allocation10], %s798_s22 }
  0x7c   : > { %s192_s11 = smul.u32 %s1379_s24, %s191_s19  ;;  %s193_s20 = ssub.s32 1, %s191_s19 }
  0x7d   : > { %s799_s8 = sshll.u32 %s195_s27, 3 }
  0x7e   : > { %s194_s9 = sadd.s32 %s193_s20, %s192_s11  ;;  %s197_s14 = ssub.s32 25, %s799_s8 }
  0x7f   : > { %p198_p2 = scmp.lt.s32.totalorder %s197_s14, 8 }
  0x81   : > { %s2244_s14 = smov (!%p198_p2, %s197_s14), 8 }
  0x82   : > { %s1726_s28 = sshll.u32 %s2244_s14, 7 }
  0x83   : > { %s202_s17 = ssub.s32 1024, %s1726_s28 }
  0x84   : > { %203 = vsyncadd %s1729_s1, %s202_s17  ;;  %p801_p11 = scmp.ne.s32.totalorder %s1726_s28, 0  ;;  %s831_s23 = sshll.u32 %s195_s27, 4 }
  0x85   : > { %s206_s19 = sadd.s32 %s831_s23, %s194_s9  ;;  %s210_s11 = sshll.u32 %s190_s21, 4  ;;  %s1733_s11 = int_to_ptr.vmem [resolvable:$true] %s210_s11 }
  0x86   : > { %s803_s20 = sshll.u32 %s206_s19, 7  ;;  %s2172_s29 = sld [smem:[#allocation40_spill]] }
  0x8c   : > { %s1738_s3 = scalar_lea.hbm %s2172_s29, %s803_s20  ;;  %s1171_s9 = scalar_lea.hbm %s2172_s29, 6400 }
  0x8d   : > { %s1167_s7 = scalar_lea.hbm %s1738_s3, %s1726_s28  ;;  %p1172_p7 = scmp.lt.u32.totalorder %s1738_s3, %s2172_s29 }
  0x8e   : > { %p1168_p3 = scmp.ne.s32.totalorder %s1738_s3, %s1167_s7  ;;  %p1173_p8 = scmp.lt.u32.totalorder %s1171_s9, %s1167_s7 }
  0x8f   : > { %p1175_p0 = scmp.lt.u32.totalorder %s1167_s7, %s1738_s3 }
  0x90   : > { %p1169_p5 = pnand %p1168_p3, %p801_p11  ;;  %p1174_p9 = por %p1173_p8, %p1172_p7 }
  0x92   : > { %p1170_p6 = pneg %p1169_p5  ;;  %p1176_p2 = por %p1175_p0, %p1174_p9 }
  0x94   : > { %p1177_p13 = pnand %p1176_p2, %p1170_p6 }
  0x96   : > { %1180 = shalt.err (!%p1177_p13)
}
  0x97   : > { %s1181_s23 = scalar_lea.vmem %s1733_s11, %s1726_s28  ;;  %s1399_s19 = smov [#allocation10]  }
  0x98   : > { %p1182_p3 = scmp.ne.s32.totalorder %s1733_s11, %s1181_s23  ;;  %s1185_s20 = sshll.u32 %s1399_s19, 4  ;;  %s1186_s20 = int_to_ptr.vmem [resolvable:$false] %s1185_s20 }
  0x99   : > { %s1187_s8 = scalar_lea.vmem %s1186_s20, 2048  ;;  %p1188_p4 = scmp.lt.s32.totalorder %s1733_s11, %s1186_s20 }
  0x9a   : > { %p1183_p5 = pnand %p1182_p3, %p801_p11  ;;  %p1189_p7 = scmp.lt.s32.totalorder %s1187_s8, %s1181_s23 }
  0x9c   : > { %p1184_p10 = pneg %p1183_p5  ;;  %p1190_p8 = por %p1189_p7, %p1188_p4 }
  0x9e   : > { %p1191_p9 = pnand %p1190_p8, %p1184_p10 }
  0xa0   : > { %1194 = shalt.err (!%p1191_p9)
}
  0xa1   : > { %s1400_s14 = smov 256   ;;  %s1401_s7 = smov 128  }
  0xa2   : > { %s1402_s22 = smov 8  }
  0xa3   : > { %216 = dma.hbm_to_vmem [thread:$0]  (%p801_p11), %s1738_s3, %s1726_s28, %s1733_s11, %s1729_s1, %s1400_s14, %s1401_s7, %s1402_s22  }
  0xa4 PF: > { %s2173_s27 = sld [smem:[#allocation31_spill]]  ;;  %s220_s9 = sand.u32 1, %s1351_s5  }
  0xa5   : > { %s806_s17 = sshll.u32 %s220_s9, 7 }
  0xa6   : > { %s951_s21 = scalar_select %p1681_p1, [#allocation4], [#allocation16] }
  0xa7   : > { %s952_s23 = scalar_select %p1681_p1, %s1383_s0, 0 }
  0xa8   : > { %s953_s19 = scalar_select %p1681_p1, [#allocation9], [#allocation17] }
  0xa9   : > { %s225_s20 = sld [smem:[%s951_s21 + %s952_s23]]  ;;  %s224_s28 = scalar_lea.vmem [#allocation13], %s806_s17 }
  0xaa   : > { %s229_s8 = sld [smem:[%s953_s19 + %s952_s23]]  ;;  %s832_s3 = sshll.u32 %s2173_s27, 5 }
  0xab   : > { %s240_s1 = sshll.u32 %s224_s28, 4  ;;  %s2174_s0 = sld [smem:[#allocation41_spill]]  ;;  %s1775_s1 = int_to_ptr.vmem [resolvable:$true] %s240_s1 }
  0xac   : > { %s1782_s27 = scalar_lea.sflag [#allocation14], %s220_s9 }
  0xaf   : > { %s226_s11 = smul.u32 %s1379_s24, %s225_s20  ;;  %s227_s14 = ssub.s32 1, %s225_s20 }
  0xb0   : > { %s949_s7 = smul.u32 96, %s229_s8 }
  0xb1   : > { %s228_s22 = sadd.s32 %s227_s14, %s226_s11  ;;  %s2175_s6 = smov %s2174_s0 }
  0xb2   : > { %s235_s29 = sadd.s32 %s832_s3, %s228_s22 }
  0xb3   : > { %s237_s10 = sadd.s32 %s949_s7, %s235_s29  ;;  %s1199_s29 = scalar_lea.hbm %s2175_s6, 49152 }
  0xb4   : > { %s809_s2 = sshll.u32 %s237_s10, 7 }
  0xb5   : > { %s1780_s16 = scalar_lea.hbm %s2174_s0, %s809_s2 }
  0xb6   : > { %s1195_s17 = scalar_lea.hbm %s1780_s16, 2048  ;;  %p1200_p11 = scmp.lt.u32.totalorder %s1780_s16, %s2175_s6 }
  0xb7   : > { %p1196_p4 = scmp.ne.s32.totalorder %s1780_s16, %s1195_s17  ;;  %p1201_p6 = scmp.lt.u32.totalorder %s1199_s29, %s1195_s17 }
  0xb8   : > { %p1203_p2 = scmp.lt.u32.totalorder %s1195_s17, %s1780_s16 }
  0xb9   : > { %p1197_p10 = pnand %p1196_p4, %p1681_p1  ;;  %p1202_p0 = por %p1201_p6, %p1200_p11 }
  0xbb   : > { %p1198_p13 = pneg %p1197_p10  ;;  %p1204_p3 = por %p1203_p2, %p1202_p0 }
  0xbd   : > { %p1205_p5 = pnand %p1204_p3, %p1198_p13 }
  0xbf   : > { %1208 = shalt.err (!%p1205_p5)
}
  0xc0   : > { %s1209_s5 = scalar_lea.vmem %s1775_s1, 2048  ;;  %s1403_s2 = smov [#allocation13]  }
  0xc1   : > { %p1210_p7 = scmp.ne.s32.totalorder %s1775_s1, %s1209_s5  ;;  %s1213_s0 = sshll.u32 %s1403_s2, 4  ;;  %s1214_s0 = int_to_ptr.vmem [resolvable:$false] %s1213_s0 }
  0xc2   : > { %s1215_s12 = scalar_lea.vmem %s1214_s0, 4096  ;;  %p1216_p4 = scmp.lt.s32.totalorder %s1775_s1, %s1214_s0 }
  0xc3   : > { %p1211_p8 = pnand %p1210_p7, %p1681_p1  ;;  %p1217_p10 = scmp.lt.s32.totalorder %s1215_s12, %s1209_s5 }
  0xc5   : > { %p1212_p9 = pneg %p1211_p8  ;;  %p1218_p11 = por %p1217_p10, %p1216_p4 }
  0xc7   : > { %p1219_p6 = pnand %p1218_p11, %p1212_p9 }
  0xc9   : > { %1222 = shalt.err (!%p1219_p6)
}
  0xca   : > { %s1404_s9 = smov 256   ;;  %s1405_s20 = smov 128  }
  0xcb   : > { %s1406_s8 = smov 8  }
  0xcc   : > { %955 = dma.hbm_to_vmem [thread:$0]  (%p1681_p1), %s1780_s16, 2048, %s1775_s1, %s1782_s27, %s1404_s9, %s1405_s20, %s1406_s8  }
  0xcd PF: > { %p810_p13 = scmp.ge.s32.totalorder %s1391_s26, 1  ;;  %p248_p0 = scmp.lt.s32.totalorder %s1391_s26, 43 }
  0xcf   : > { %p249_p2 = pnand %p810_p13, %p248_p0 }
  0xd0   : > { %s2176_s3 = sld [smem:[#allocation25_spill]] (!%p249_p2) }
  0xd1   : > { %252 = sbr.rel (%p249_p2) target bundleno = 649 (0x289), region = 28 }
  0xd6   : > { %s254_s11 = sand.u32 (!%p249_p2), 1, %s2176_s3  }
  0xd7   : > { %s811_s14 = sshll.u32 (!%p249_p2), %s254_s11, 6  ;;  %s255_s7 = scalar_lea.sflag (!%p249_p2), [#allocation11], %s254_s11 }
  0xd8   : > { %s1809_s22 = scalar_lea.vmem [#allocation10], %s811_s14 }
  0xd9   : > { %1318 = dma.done.wait (%p1651_p12), %s255_s7, 1024  }
  0xda   : > { %1320 = vsyncadd (%p1651_p12), %s255_s7, 4294966272  ;;  %s263_s16 = sand.u32 1, %s1347_s18   ;;  %p2178_p1 = scmp.ne.s32.totalorder %s2164_s13, 0 }
  0xdb   : > { %s812_s4 = sshll.u32 %s263_s16, 7  ;;  %s264_s1 = scalar_lea.sflag [#allocation14], %s263_s16 }
  0xdc   : > { %s1816_s27 = scalar_lea.vmem [#allocation13], %s812_s4 }
  0xdd   : > { %1322 = dma.done.wait (%p2178_p1), %s264_s1, 2048  }
  0xde   : > { %1324 = vsyncadd (%p2178_p1), %s264_s1, 4294965248  ;;  %s2179_s17 = sld [smem:[#allocation28_spill]]  ;;  %s290_s21 = sand.u32 1, %s1335_s15  }
  0xdf   : > { %s813_s29 = sshll.u32 %s290_s21, 6 }
  0xe0   : > { %s1826_s10 = scalar_lea.vmem [#allocation15], %s813_s29 }
  0xe4   : > { %s315_s23 = sld [smem:[#allocation4 + %s2179_s17]] }
  0xea   : > { %p814_p12 = scmp.eq.s32.totalorder %s315_s23, 0 }
  0xeb   : > { %v328_v0 = vld [vmem:[%s1816_s27] sm:$0xff] (!%p814_p12)  ;;  %v329_v1 = vld [vmem:[%s1816_s27 + $0x8] sm:$0xff] (!%p814_p12)  ;;  %v330_v2 = vld [vmem:[%s1816_s27 + $0x10] sm:$0xff] (!%p814_p12)  ;;  %s2180_s13 = sld [smem:[#allocation27_spill]] (!%p814_p12) }
  0xec   : > { %319 = sbr.rel (%p814_p12) target bundleno = 599 (0x257), region = 40  ;;  %v901_v3 = vpack.c.bf16 (!%p814_p12), %v329_v1, %v328_v0  ;;  %v331_v4 = vld [vmem:[%s1816_s27 + $0x18] sm:$0xff] (!%p814_p12)  ;;  %v320_v6 = vld [vmem:[%s1809_s22] sm:$0xff] (!%p814_p12)  ;;  %v333_v9 = vld [vmem:[%s1816_s27 + $0x28] sm:$0xff] (!%p814_p12) }
  0xed   : > { %v905_v5 = vpack.c.bf16 (!%p814_p12), %v331_v4, %v330_v2  ;;  %v324_v7 = vld [vmem:[%s1809_s22 + $0x20] sm:$0xff] (!%p814_p12)  ;;  %889 = vmatprep.mubr.f32.mxu0 (!%p814_p12), %v320_v6  ;;  %v334_v11 = vld [vmem:[%s1816_s27 + $0x30] sm:$0xff] (!%p814_p12)  ;;  %v335_v12 = vld [vmem:[%s1816_s27 + $0x38] sm:$0xff] (!%p814_p12) }
  0xee   : > { %902 = vmatprep.subr.bf16.mxu0 (!%p814_p12), %v901_v3  ;;  %933 = vmatprep.subr.bf16.mxu1 (!%p814_p12), %v901_v3  ;;  %v332_v8 = vld [vmem:[%s1816_s27 + $0x20] sm:$0xff] (!%p814_p12)  ;;  %v913_v13 = vpack.c.bf16 (!%p814_p12), %v335_v12, %v334_v11  ;;  %v337_v15 = vld [vmem:[%s1816_s27 + $0x48] sm:$0xff] (!%p814_p12)  ;;  %v338_v17 = vld [vmem:[%s1816_s27 + $0x50] sm:$0xff] (!%p814_p12) }
  0xef   : > { %904 = vmatpush3.bf16.xpose.msra.mxu0 (!%p814_p12), %v901_v3  ;;  %941 = vmatpush3.bf16.xpose.msra.mxu1 (!%p814_p12), %v901_v3  ;;  %v909_v10 = vpack.c.bf16 (!%p814_p12), %v333_v9, %v332_v8  ;;  %v336_v14 = vld [vmem:[%s1816_s27 + $0x40] sm:$0xff] (!%p814_p12)  ;;  %v339_v18 = vld [vmem:[%s1816_s27 + $0x58] sm:$0xff] (!%p814_p12)  ;;  %v341_v21 = vld [vmem:[%s1816_s27 + $0x68] sm:$0xff] (!%p814_p12) }
  0xf0   : > { %906 = vmatprep.subr.bf16.mxu0 (!%p814_p12), %v905_v5  ;;  %934 = vmatprep.subr.bf16.mxu1 (!%p814_p12), %v905_v5  ;;  %v917_v16 = vpack.c.bf16 (!%p814_p12), %v337_v15, %v336_v14  ;;  %v921_v19 = vpack.c.bf16 (!%p814_p12), %v339_v18, %v338_v17  ;;  %v340_v20 = vld [vmem:[%s1816_s27 + $0x60] sm:$0xff] (!%p814_p12)  ;;  %v342_v23 = vld [vmem:[%s1816_s27 + $0x70] sm:$0xff] (!%p814_p12)  ;;  %v343_v24 = vld [vmem:[%s1816_s27 + $0x78] sm:$0xff] (!%p814_p12) }
  0xf1   : > { %895 = vmatprep.mubr.f32.mxu1 (!%p814_p12), %v324_v7  ;;  %v925_v22 = vpack.c.bf16 (!%p814_p12), %v341_v21, %v340_v20  ;;  %v929_v25 = vpack.c.bf16 (!%p814_p12), %v343_v24, %v342_v23  ;;  %v321_v26 = vld [vmem:[%s1809_s22 + $0x8] sm:$0xff] (!%p814_p12)  ;;  %v322_v28 = vld [vmem:[%s1809_s22 + $0x10] sm:$0xff] (!%p814_p12)  ;;  %v323_v30 = vld [vmem:[%s1809_s22 + $0x18] sm:$0xff] (!%p814_p12)  ;;  %p815_p3 = scmp.ne.s32.totalorder (!%p814_p12), %s2180_s13, 0 }
  0xf2   : > { %v325_v27 = vld [vmem:[%s1809_s22 + $0x28] sm:$0xff] (!%p814_p12)  ;;  %v326_v29 = vld [vmem:[%s1809_s22 + $0x30] sm:$0xff] (!%p814_p12)  ;;  %v327_v31 = vld [vmem:[%s1809_s22 + $0x38] sm:$0xff] (!%p814_p12) }
  0xf7   : > { %908 = vmatpush3.bf16.xpose.msra.mxu0 %v905_v5  ;;  %942 = vmatpush3.bf16.xpose.msra.mxu1 %v905_v5 }
  0xf8   : > { %910 = vmatprep.subr.bf16.mxu0 %v909_v10  ;;  %935 = vmatprep.subr.bf16.mxu1 %v909_v10 }
  0xff   : > { %912 = vmatpush3.bf16.xpose.msra.mxu0 %v909_v10  ;;  %943 = vmatpush3.bf16.xpose.msra.mxu1 %v909_v10 }
 0x100   : > { %914 = vmatprep.subr.bf16.mxu0 %v913_v13  ;;  %936 = vmatprep.subr.bf16.mxu1 %v913_v13 }
 0x107   : > { %916 = vmatpush3.bf16.xpose.msra.mxu0 %v913_v13  ;;  %944 = vmatpush3.bf16.xpose.msra.mxu1 %v913_v13 }
 0x108   : > { %918 = vmatprep.subr.bf16.mxu0 %v917_v16  ;;  %937 = vmatprep.subr.bf16.mxu1 %v917_v16 }
 0x10f   : > { %920 = vmatpush3.bf16.xpose.msra.mxu0 %v917_v16  ;;  %945 = vmatpush3.bf16.xpose.msra.mxu1 %v917_v16 }
 0x110   : > { %922 = vmatprep.subr.bf16.mxu0 %v921_v19  ;;  %938 = vmatprep.subr.bf16.mxu1 %v921_v19 }
 0x117   : > { %924 = vmatpush3.bf16.xpose.msra.mxu0 %v921_v19  ;;  %946 = vmatpush3.bf16.xpose.msra.mxu1 %v921_v19 }
 0x118   : > { %926 = vmatprep.subr.bf16.mxu0 %v925_v22  ;;  %939 = vmatprep.subr.bf16.mxu1 %v925_v22 }
 0x11f   : > { %928 = vmatpush3.bf16.xpose.msra.mxu0 %v925_v22  ;;  %947 = vmatpush3.bf16.xpose.msra.mxu1 %v925_v22 }
 0x120   : > { %930 = vmatprep.subr.bf16.mxu0 %v929_v25  ;;  %940 = vmatprep.subr.bf16.mxu1 %v929_v25 }
 0x127   : > { %932 = vmatpush3.bf16.xpose.msra.mxu0 %v929_v25  ;;  %948 = vmatpush3.bf16.xpose.msra.mxu1 %v929_v25 }
 0x12e   : > { %890 = vmatmul.mubr.f32.vlgmr.msra.gmra.mrb[0].mxu0 %v321_v26  ;;  %896 = vmatmul.mubr.f32.vlgmr.msra.gmra.mrb[0].mxu1 %v325_v27 }
 0x12f   : > { %892 = vmatprep.mubr.f32.mxu0 %v322_v28  ;;  %898 = vmatprep.mubr.f32.mxu1 %v326_v29 }
 0x132   : > { %893 = vmatmul.mubr.f32.gmra.mrb[2].mxu0 %v323_v30  ;;  %899 = vmatmul.mubr.f32.gmra.mrb[2].mxu1 %v327_v31 }
 0x200   : > { %452 = sbr.rel (%p815_p3) target bundleno = 520 (0x208), region = 44 }
 0x201   : > { %v891_v32 = vpop.f32.mrb[0].mxu0  ;;  %v897_v33 = vpop.f32.mrb[0].mxu1 }
 0x202   : > { %v410_v34 = vpop.f32.mrb[1].mxu0  ;;  %v430_v35 = vpop.f32.mrb[1].mxu1  ;;  %454 = vst [vmem:[#allocation2 + $0x8] sm:$0xff] (!%p815_p3), %v891_v32  ;;  %458 = vst [vmem:[#allocation2 + $0x28] sm:$0xff] (!%p815_p3), %v897_v33 }
 0x203   : > { %453 = vst [vmem:[#allocation2] sm:$0xff] (!%p815_p3), %v410_v34  ;;  %457 = vst [vmem:[#allocation2 + $0x20] sm:$0xff] (!%p815_p3), %v430_v35 }
 0x205   : > { %v894_v36 = vpop.f32.mrb[2].mxu0  ;;  %v900_v37 = vpop.f32.mrb[2].mxu1 }
 0x206   : > { %v420_v38 = vpop.f32.mrb[3].mxu0  ;;  %v440_v39 = vpop.f32.mrb[3].mxu1  ;;  %456 = vst [vmem:[#allocation2 + $0x18] sm:$0xff] (!%p815_p3), %v894_v36  ;;  %460 = vst [vmem:[#allocation2 + $0x38] sm:$0xff] (!%p815_p3), %v900_v37 }
 0x207   : > { %455 = vst [vmem:[#allocation2 + $0x10] sm:$0xff] %v420_v38  ;;  %459 = vst [vmem:[#allocation2 + $0x30] sm:$0xff] %v440_v39 }
 0x208 PF: > { %s2181_s19 = sld [smem:[#allocation27_spill]] }
 0x20e   : > { %p816_p5 = scmp.eq.s32.totalorder %s2181_s19, 0 }
 0x20f   : > { %v465_v40 = vld [vmem:[#allocation2] sm:$0xff] (!%p816_p5)  ;;  %v466_v41 = vld [vmem:[#allocation2 + $0x8] sm:$0xff] (!%p816_p5)  ;;  %v467_v42 = vld [vmem:[#allocation2 + $0x10] sm:$0xff] (!%p816_p5) }
 0x210   : > { %464 = sbr.rel (%p816_p5) target bundleno = 535 (0x217), region = 48  ;;  %v473_v43 = vadd.f32 (!%p816_p5), %v465_v40, %v410_v34  ;;  %v474_v44 = vadd.f32 (!%p816_p5), %v891_v32, %v466_v41  ;;  %v475_v45 = vadd.f32 (!%p816_p5), %v467_v42, %v420_v38  ;;  %v468_v46 = vld [vmem:[#allocation2 + $0x18] sm:$0xff] (!%p816_p5)  ;;  %v469_v47 = vld [vmem:[#allocation2 + $0x20] sm:$0xff] (!%p816_p5)  ;;  %v470_v48 = vld [vmem:[#allocation2 + $0x28] sm:$0xff] (!%p816_p5) }
 0x211   : > { %v476_v49 = vadd.f32 (!%p816_p5), %v894_v36, %v468_v46  ;;  %v477_v50 = vadd.f32 (!%p816_p5), %v469_v47, %v430_v35  ;;  %v478_v51 = vadd.f32 (!%p816_p5), %v897_v33, %v470_v48  ;;  %v471_v52 = vld [vmem:[#allocation2 + $0x30] sm:$0xff] (!%p816_p5)  ;;  %v472_v53 = vld [vmem:[#allocation2 + $0x38] sm:$0xff] (!%p816_p5) }
 0x212   : > { %481 = vst [vmem:[#allocation2] sm:$0xff] (!%p816_p5), %v473_v43  ;;  %482 = vst [vmem:[#allocation2 + $0x8] sm:$0xff] (!%p816_p5), %v474_v44  ;;  %v479_v54 = vadd.f32 (!%p816_p5), %v471_v52, %v440_v39  ;;  %v480_v55 = vadd.f32 (!%p816_p5), %v900_v37, %v472_v53 }
 0x213   : > { %483 = vst [vmem:[#allocation2 + $0x10] sm:$0xff] (!%p816_p5), %v475_v45  ;;  %484 = vst [vmem:[#allocation2 + $0x18] sm:$0xff] (!%p816_p5), %v476_v49 }
 0x214   : > { %485 = vst [vmem:[#allocation2 + $0x20] sm:$0xff] (!%p816_p5), %v477_v50  ;;  %486 = vst [vmem:[#allocation2 + $0x28] sm:$0xff] (!%p816_p5), %v478_v51 }
 0x215   : > { %487 = vst [vmem:[#allocation2 + $0x30] sm:$0xff] (!%p816_p5), %v479_v54  ;;  %488 = vst [vmem:[#allocation2 + $0x38] sm:$0xff] (!%p816_p5), %v480_v55 }
 0x217 PF: > { %s2182_s5 = sld [smem:[#allocation27_spill]] }
 0x21d   : > { %p817_p7 = scmp.ne.s32.totalorder %s2182_s5, 1 }
 0x21e   : > { %s2183_s2 = sld [smem:[#allocation28_spill]] (!%p817_p7)  ;;  %v1858_v56 = vld [vmem:[#allocation2] sm:$0xff] (!%p817_p7)  ;;  %v1860_v57 = vld [vmem:[#allocation2 + $0x8] sm:$0xff] (!%p817_p7)  ;;  %v1862_v58 = vld [vmem:[#allocation2 + $0x10] sm:$0xff] (!%p817_p7) }
 0x21f   : > { %492 = sbr.rel (%p817_p7) target bundleno = 599 (0x257), region = 52  ;;  %v1868_v59 = vld [vmem:[#allocation2 + $0x18] sm:$0xff] (!%p817_p7)  ;;  %v1870_v60 = vld [vmem:[#allocation2 + $0x20] sm:$0xff] (!%p817_p7)  ;;  %v1872_v61 = vld [vmem:[#allocation2 + $0x28] sm:$0xff] (!%p817_p7) }
 0x220   : > { %v1874_v62 = vld [vmem:[#allocation2 + $0x30] sm:$0xff] (!%p817_p7)  ;;  %v1876_v63 = vld [vmem:[#allocation2 + $0x38] sm:$0xff] (!%p817_p7) }
 0x224   : > { %s1856_s0 = sld [smem:[#allocation5 + %s2183_s2]] (!%p817_p7) }
 0x225   : > { %s1865_s12 = sld [smem:[#allocation6 + %s2183_s2]] (!%p817_p7) }
 0x226   : > { %s495_s9 = sld [smem:[#allocation7 + %s2183_s2]] }
 0x22c   : > { %s818_s20 = sshll.u32 %s495_s9, 6 }
 0x22d   : > { %p505_p8 = scmp.le.s32.totalorder %s1856_s0, %s818_s20  ;;  %s506_s8 = sadd.s32 64, %s818_s20 }
 0x22e   : > { %p507_p9 = scmp.ge.s32.totalorder %s1865_s12, %s506_s8 }
 0x230   : > { %p508_p4 = pnand %p507_p9, %p505_p8 }
 0x231   : > { %512 = vst [vmem:[%s1826_s10] sm:$0xff] (!%p508_p4), %v1858_v56  ;;  %513 = vst [vmem:[%s1826_s10 + $0x8] sm:$0xff] (!%p508_p4), %v1860_v57 }
 0x232   : > { %511 = sbr.rel (%p508_p4) target bundleno = 569 (0x239), region = 56  ;;  %514 = vst [vmem:[%s1826_s10 + $0x10] sm:$0xff] (!%p508_p4), %v1862_v58  ;;  %515 = vst [vmem:[%s1826_s10 + $0x18] sm:$0xff] (!%p508_p4), %v1868_v59 }
 0x233   : > { %516 = vst [vmem:[%s1826_s10 + $0x20] sm:$0xff] (!%p508_p4), %v1870_v60  ;;  %517 = vst [vmem:[%s1826_s10 + $0x28] sm:$0xff] (!%p508_p4), %v1872_v61 }
 0x234   : > { %518 = vst [vmem:[%s1826_s10 + $0x30] sm:$0xff] (!%p508_p4), %v1874_v62  ;;  %519 = vst [vmem:[%s1826_s10 + $0x38] sm:$0xff] (!%p508_p4), %v1876_v63 }
 0x239 PF: > { %522 = sbr.rel (!%p508_p4) target bundleno = 599 (0x257), region = 60  ;;  %v523_v0 = vlaneseq (%p508_p4)  ;;  %s2184_s3 = sld [smem:[#allocation28_spill]] (%p508_p4)  ;;  %v532_v2 = vstv (%p508_p4), %s818_s20  ;;  %v541_v3 = vstv (%p508_p4), %s1856_s0  ;;  %v550_v15 = vstv (%p508_p4), %s1865_s12 }
 0x23a   : > { %v2185_v20 = vmov (%p508_p4), 0  ;;  %v2187_v21 = vmov (%p508_p4), 0 }
 0x23b   : > { %v524_v1 = vshrl.u32 (%p508_p4), %v523_v0, 7 }
 0x23d   : > { %v525_v4 = vadd.s32 (%p508_p4), 8, %v524_v1  ;;  %v526_v5 = vadd.s32 (%p508_p4), 16, %v524_v1  ;;  %v527_v6 = vadd.s32 (%p508_p4), 24, %v524_v1  ;;  %v528_v7 = vadd.s32 (%p508_p4), 32, %v524_v1 }
 0x23e   : > { %v529_v8 = vadd.s32 (%p508_p4), 40, %v524_v1  ;;  %v530_v9 = vadd.s32 (%p508_p4), 48, %v524_v1  ;;  %v531_v10 = vadd.s32 (%p508_p4), 56, %v524_v1  ;;  %v533_v11 = vadd.s32 (%p508_p4), %v532_v2, %v524_v1 }
 0x23f   : > { %s1897_s28 = sld [smem:[#allocation8 + %s2184_s3]] (%p508_p4)  ;;  %v534_v12 = vadd.s32 (%p508_p4), %v532_v2, %v525_v4  ;;  %v535_v13 = vadd.s32 (%p508_p4), %v532_v2, %v526_v5  ;;  %v536_v14 = vadd.s32 (%p508_p4), %v532_v2, %v527_v6  ;;  %v537_v16 = vadd.s32 (%p508_p4), %v532_v2, %v528_v7 }
 0x240   : > { %vm542_vm0 = vcmp.ge.s32.totalorder %v533_v11, %v541_v3  ;;  %v538_v17 = vadd.s32 %v532_v2, %v529_v8  ;;  %v539_v18 = vadd.s32 %v532_v2, %v530_v9  ;;  %v540_v19 = vadd.s32 %v532_v2, %v531_v10 }
 0x241   : > { %vm543_vm1 = vcmp.ge.s32.totalorder %v534_v12, %v541_v3  ;;  %vm544_vm2 = vcmp.ge.s32.totalorder %v535_v13, %v541_v3  ;;  %vm551_vm3 = vcmp.lt.s32.totalorder %v533_v11, %v550_v15  ;;  %vm545_vm4 = vcmp.ge.s32.totalorder %v536_v14, %v541_v3 }
 0x242   : > { %vm552_vm5 = vcmp.lt.s32.totalorder %v534_v12, %v550_v15  ;;  %vm553_vm6 = vcmp.lt.s32.totalorder %v535_v13, %v550_v15  ;;  %vm554_vm7 = vcmp.lt.s32.totalorder %v536_v14, %v550_v15  ;;  %vm1901_vm8 = vmand %vm542_vm0, %vm551_vm3  ;;  %vm546_vm9 = vcmp.ge.s32.totalorder %v537_v16, %v541_v3 }
 0x243   : > { %v2186_v20 = vsel %vm1901_vm8, 4294967295, %v2185_v20  ;;  %vm555_vm10 = vcmp.lt.s32.totalorder %v537_v16, %v550_v15  ;;  %vm1905_vm11 = vmand %vm543_vm1, %vm552_vm5  ;;  %vm547_vm12 = vcmp.ge.s32.totalorder %v538_v17, %v541_v3  ;;  %vm556_vm13 = vcmp.lt.s32.totalorder %v538_v17, %v550_v15 }
 0x244   : > { %v2188_v21 = vsel %vm1905_vm11, 4294967295, %v2187_v21  ;;  %vm1909_vm14 = vmand %vm544_vm2, %vm553_vm6  ;;  %vm548_vm15 = vcmp.ge.s32.totalorder %v539_v18, %v541_v3  ;;  %vm557_vm0 = vcmp.lt.s32.totalorder %v539_v18, %v550_v15  ;;  %vm549_vm8 = vcmp.ge.s32.totalorder %v540_v19, %v541_v3 }
 0x245   : > { %vm1913_vm3 = vmand %vm545_vm4, %vm554_vm7  ;;  %vm558_vm1 = vcmp.lt.s32.totalorder %v540_v19, %v550_v15  ;;  %p819_p10 = scmp.eq.s32.totalorder %s1897_s28, 0 }
 0x246   : > { %vm1917_vm5 = vmand %vm546_vm9, %vm555_vm10  ;;  %vm2201_vm4 = vnez (!%p819_p10), %v2186_v20  ;;  %vm2202_vm7 = vnez (!%p819_p10), %v2188_v21  ;;  %v590_v30 = vsel (!%p819_p10), %vm1909_vm14, %v1862_v58, 0.0  ;;  %v591_v31 = vsel (!%p819_p10), %vm1913_vm3, %v1868_v59, 0.0 }
 0x247   : > { %vm1921_vm11 = vmand %vm547_vm12, %vm556_vm13  ;;  %571 = sbr.rel (%p819_p10) target bundleno = 590 (0x24e), region = 64  ;;  %v588_v28 = vsel (!%p819_p10), %vm2201_vm4, %v1858_v56, 0.0  ;;  %v589_v29 = vsel (!%p819_p10), %vm2202_vm7, %v1860_v57, 0.0  ;;  %598 = vst [vmem:[%s1826_s10 + $0x10] sm:$0xff] (!%p819_p10), %v590_v30  ;;  %v592_v32 = vsel (!%p819_p10), %vm1917_vm5, %v1870_v60, 0.0 }
 0x248   : > { %vm1925_vm2 = vmand %vm548_vm15, %vm557_vm0  ;;  %596 = vst [vmem:[%s1826_s10] sm:$0xff] (!%p819_p10), %v588_v28  ;;  %v593_v33 = vsel (!%p819_p10), %vm1921_vm11, %v1872_v61, 0.0 }
 0x249   : > { %vm1929_vm6 = vmand %vm549_vm8, %vm558_vm1  ;;  %597 = vst [vmem:[%s1826_s10 + $0x8] sm:$0xff] (!%p819_p10), %v589_v29  ;;  %v594_v34 = vsel (!%p819_p10), %vm1925_vm2, %v1874_v62, 0.0 }
 0x24a   : > { %599 = vst [vmem:[%s1826_s10 + $0x18] sm:$0xff] (!%p819_p10), %v591_v31  ;;  %v595_v35 = vsel (!%p819_p10), %vm1929_vm6, %v1876_v63, 0.0  ;;  %600 = vst [vmem:[%s1826_s10 + $0x20] sm:$0xff] (!%p819_p10), %v592_v32 }
 0x24b   : > { %601 = vst [vmem:[%s1826_s10 + $0x28] sm:$0xff] (!%p819_p10), %v593_v33  ;;  %602 = vst [vmem:[%s1826_s10 + $0x30] sm:$0xff] (!%p819_p10), %v594_v34 }
 0x24c   : > { %603 = vst [vmem:[%s1826_s10 + $0x38] sm:$0xff] (!%p819_p10), %v595_v35 }
 0x24e PF: > { %p820_p11 = scmp.ne.s32.totalorder %s1897_s28, 0 }
 0x24f   : > { %v608_v36 = vld [vmem:[%s1826_s10] sm:$0xff] (!%p820_p11)  ;;  %v610_v38 = vld [vmem:[%s1826_s10 + $0x10] sm:$0xff] (!%p820_p11)  ;;  %vm2203_vm8 = vnez (!%p820_p11), %v2186_v20  ;;  %vm2204_vm9 = vnez (!%p820_p11), %v2188_v21 }
 0x250   : > { %607 = sbr.rel (%p820_p11) target bundleno = 599 (0x257), region = 68  ;;  %v609_v37 = vld [vmem:[%s1826_s10 + $0x8] sm:$0xff] (!%p820_p11)  ;;  %v632_v39 = vsel (!%p820_p11), %vm2203_vm8, %v1858_v56, %v608_v36  ;;  %v634_v41 = vsel (!%p820_p11), %vm1909_vm14, %v1862_v58, %v610_v38 }
 0x251   : > { %v633_v40 = vsel (!%p820_p11), %vm2204_vm9, %v1860_v57, %v609_v37  ;;  %v611_v42 = vld [vmem:[%s1826_s10 + $0x18] sm:$0xff] (!%p820_p11)  ;;  %v612_v43 = vld [vmem:[%s1826_s10 + $0x20] sm:$0xff] (!%p820_p11)  ;;  %640 = vst [vmem:[%s1826_s10] sm:$0xff] (!%p820_p11), %v632_v39  ;;  %642 = vst [vmem:[%s1826_s10 + $0x10] sm:$0xff] (!%p820_p11), %v634_v41 }
 0x252   : > { %v613_v44 = vld [vmem:[%s1826_s10 + $0x28] sm:$0xff] (!%p820_p11)  ;;  %641 = vst [vmem:[%s1826_s10 + $0x8] sm:$0xff] (!%p820_p11), %v633_v40  ;;  %v635_v45 = vsel (!%p820_p11), %vm1913_vm3, %v1868_v59, %v611_v42  ;;  %v636_v46 = vsel (!%p820_p11), %vm1917_vm5, %v1870_v60, %v612_v43  ;;  %v614_v48 = vld [vmem:[%s1826_s10 + $0x30] sm:$0xff] (!%p820_p11) }
 0x253   : > { %v637_v47 = vsel (!%p820_p11), %vm1921_vm11, %v1872_v61, %v613_v44  ;;  %v615_v49 = vld [vmem:[%s1826_s10 + $0x38] sm:$0xff] (!%p820_p11)  ;;  %643 = vst [vmem:[%s1826_s10 + $0x18] sm:$0xff] (!%p820_p11), %v635_v45  ;;  %644 = vst [vmem:[%s1826_s10 + $0x20] sm:$0xff] (!%p820_p11), %v636_v46  ;;  %v638_v50 = vsel (!%p820_p11), %vm1925_vm2, %v1874_v62, %v614_v48 }
 0x254   : > { %645 = vst [vmem:[%s1826_s10 + $0x28] sm:$0xff] (!%p820_p11), %v637_v47  ;;  %v639_v51 = vsel (!%p820_p11), %vm1929_vm6, %v1876_v63, %v615_v49  ;;  %646 = vst [vmem:[%s1826_s10 + $0x30] sm:$0xff] (!%p820_p11), %v638_v50 }
 0x255   : > { %647 = vst [vmem:[%s1826_s10 + $0x38] sm:$0xff] (!%p820_p11), %v639_v51 }
 0x257 PF: > { %s2009_s11 = scalar_lea.sflag [#allocation12], %s290_s21  ;;  %p2205_p6 = scmp.ne.s32.totalorder %s2168_s25, 0 }
 0x258   : > { %s2206_s14 = sld [smem:[#allocation28_spill]] (%p2205_p6) }
 0x259   : > { %655 = sbr.rel (!%p2205_p6) target bundleno = 649 (0x289), region = 72 }
 0x25e   : > { %s656_s7 = sld [smem:[#allocation7 + %s2206_s14]] (%p2205_p6) }
 0x264   : > { %s822_s22 = sshll.u32 %s656_s7, 3 }
 0x265   : > { %s658_s16 = ssub.s32 25, %s822_s22 }
 0x266   : > { %p659_p13 = scmp.lt.s32.totalorder %s658_s16, 8 }
 0x268   : > { %s2246_s16 = smov (!%p659_p13, %s658_s16), 8 }
 0x269   : > { %s2014_s4 = sshll.u32 %s2246_s16, 7 }
 0x26a   : > { %s663_s1 = ssub.s32 1024, %s2014_s4 }
 0x26b   : > { %664 = vsyncadd %s2009_s11, %s663_s1  ;;  %s2207_s27 = sld [smem:[#allocation29_spill]]  ;;  %p824_p0 = scmp.ne.s32.totalorder %s2014_s4, 0 }
 0x26c   : > { %s950_s25 = smul.u32 24, %s656_s7  ;;  %s671_s17 = sshll.u32 %s1826_s10, 4  ;;  %s2021_s17 = int_to_ptr.vmem [resolvable:$true] %s671_s17 }
 0x26d   : > { %s2208_s19 = sld [smem:[#allocation42_spill]]  ;;  %s1223_s2 = scalar_lea.vmem %s2021_s17, %s2014_s4 }
 0x26e   : > { %p1224_p2 = scmp.ne.s32.totalorder %s2021_s17, %s1223_s2  ;;  %s1407_s0 = smov [#allocation15]  }
 0x26f   : > { %s1227_s9 = sshll.u32 %s1407_s0, 4  ;;  %s1228_s9 = int_to_ptr.vmem [resolvable:$false] %s1227_s9 }
 0x270   : > { %p1225_p1 = pnand %p1224_p2, %p824_p0  ;;  %s1229_s10 = scalar_lea.vmem %s1228_s9, 2048 }
 0x271   : > { %s667_s21 = sadd.s32 %s2207_s27, %s950_s25  ;;  %p1230_p3 = scmp.lt.s32.totalorder %s2021_s17, %s1228_s9 }
 0x272   : > { %s826_s23 = sshll.u32 %s667_s21, 7  ;;  %p1226_p12 = pneg %p1225_p1 }
 0x273   : > { %s2209_s12 = smov %s2208_s19  ;;  %s2026_s5 = scalar_lea.hbm %s2208_s19, %s826_s23 }
 0x274   : > { %p1231_p5 = scmp.lt.s32.totalorder %s1229_s10, %s1223_s2 }
 0x276   : > { %p1232_p7 = por %p1231_p5, %p1230_p3 }
 0x278   : > { %p1233_p8 = pnand %p1232_p7, %p1226_p12 }
 0x27a   : > { %1236 = shalt.err (!%p1233_p8)
}
 0x27b   : > { %s1237_s20 = scalar_lea.hbm %s2026_s5, %s2014_s4  ;;  %s1241_s28 = scalar_lea.hbm %s2209_s12, 9600 }
 0x27c   : > { %p1238_p9 = scmp.ne.s32.totalorder %s2026_s5, %s1237_s20  ;;  %p1242_p11 = scmp.lt.u32.totalorder %s2026_s5, %s2209_s12 }
 0x27d   : > { %p1243_p6 = scmp.lt.u32.totalorder %s1241_s28, %s1237_s20  ;;  %p1245_p2 = scmp.lt.u32.totalorder %s1237_s20, %s2026_s5 }
 0x27e   : > { %p1239_p4 = pnand %p1238_p9, %p824_p0 }
 0x27f   : > { %p1244_p13 = por %p1243_p6, %p1242_p11 }
 0x280   : > { %p1240_p10 = pneg %p1239_p4 }
 0x281   : > { %p1246_p1 = por %p1245_p2, %p1244_p13 }
 0x283   : > { %p1247_p12 = pnand %p1246_p1, %p1240_p10 }
 0x285   : > { %1250 = shalt.err (!%p1247_p12)
}
 0x286   : > { %s1408_s22 = smov 128   ;;  %s1409_s16 = smov 384  }
 0x287   : > { %s1410_s1 = smov 8  }
 0x288   : > { %677 = dma.vmem_to_hbm [thread:$0]  (%p824_p0), %s2021_s17, %s2014_s4, %s2026_s5, %s2009_s11, %s1408_s22, %s1409_s16, %s1410_s1  }
 0x289 PF: > { %s2210_s27 = sld [smem:[#allocation22_spill]]  ;;  %p963_p3 = scmp.ge.s32.totalorder %s1391_s26, 2 }
 0x28a   : > { %p2211_p5 = scmp.ne.s32.totalorder %s2169_s30, 0 }
 0x28c   : > { %p960_p7 = pnand %p963_p3, %p2211_p5 }
 0x28f   : > { %s686_s25 = sand.u32 1, %s2210_s27  }
 0x290   : > { %s687_s21 = scalar_lea.sflag [#allocation12], %s686_s25 }
 0x291   : > { %1326 = dma.done.wait (!%p960_p7), %s687_s21, 1024  }
 0x292   : > { %1328 = vsyncadd (!%p960_p7), %s687_s21, 4294966272  ;;  %s41_s26 = sadd.s32 1, %s1391_s26   ;;  %s2213_s11 = sld [smem:[#allocation23_spill]] }
 0x293   : > { %p2058_p8 = scmp.ge.s32.totalorder %s41_s26, 44   ;;  %s2214_s16 = sld [smem:[#allocation39_spill]] }
 0x294   : > { %s2215_s29 = sld [smem:[#allocation24_spill]]  ;;  %s2216_s5 = sld [smem:[#allocation38_spill]] }
 0x295   : > { %s2217_s19 = sld [smem:[#allocation25_spill]]  ;;  %s2218_s20 = sld [smem:[#allocation26_spill]] }
 0x296   : > { %s2219_s2 = sld [smem:[#allocation37_spill]]  ;;  %s2220_s22 = sld [smem:[#allocation30_spill]] }
 0x297   : > { %s2221_s30 = sld [smem:[#allocation31_spill]]  ;;  %s2222_s13 = sld [smem:[#allocation32_spill]] }
 0x298   : > { %s2223_s0 = sld [smem:[#allocation33_spill]]  ;;  %s2224_s25 = sld [smem:[#allocation34_spill]] }
 0x299   : > { %s2225_s4 = smov %s1335_s15  ;;  %s2227_s15 = smov %s2213_s11 }
 0x29a   : > { %s2228_s17 = smov %s1347_s18  ;;  %s2229_s18 = smov %s2215_s29 }
 0x29b   : > { %s2230_s21 = smov %s1379_s24  ;;  %40 = sbr.rel (!%p2058_p8) target bundleno = 61 (0x3d), region = 118 }
 0x29d   : > { %s2231_s23 = smov %s2221_s30  ;;  %s2232_s24 = smov %s2222_s13 }
 0x2a2   :  { %692 = vsyncpa [#allocation11], 1 }
 0x2a3   :  { %694 = vsyncpa [#allocation11 + $0x1], 1 }
 0x2a4   :  { %695 = vsyncpa [#allocation14], 1 }
 0x2a5   :  { %697 = vsyncpa [#allocation14 + $0x1], 1 }
 0x2a6   :  { %698 = vsyncpa [#allocation12], 1 }
 0x2a7   :  { %700 = vsyncpa [#allocation12 + $0x1], 1 }

</bundles_post_ra>
